<compile_context>
chip_gen: v5e
topology: v5e:2x2
jax: 0.10.0
libtpu: 0.0.40
codegen_flags: <defaults>
</compile_context>

<pallas_src>
import jax
import jax.numpy as jnp
from jax.experimental import pallas as pl
from jax.experimental.pallas import tpu as pltpu


def _round_up(x, m):
    return ((x + m - 1) // m) * m


def _nlinear_kernel(x_ref, w1_ref, b1_ref, w2_ref, b2_ref, w3_ref, b3_ref, o_ref):
    # x_ref: (TB, F) bf16; w1: (F, 64) bf16; w2: (64, 16) f32; w3: (16, N_pad) f32
    # biases: (1, N) f32. All matmuls accumulate in f32 on the MXU.
    h1 = jnp.dot(x_ref[...], w1_ref[...], preferred_element_type=jnp.float32)
    h1 = jnp.maximum(h1 + b1_ref[...], 0.0)

    h2 = jnp.dot(h1, w2_ref[...], preferred_element_type=jnp.float32)
    h2 = jnp.maximum(h2 + b2_ref[...], 0.0)

    h3 = jnp.dot(h2, w3_ref[...], preferred_element_type=jnp.float32)
    h3 = jnp.maximum(h3 + b3_ref[...], 0.0)

    o_ref[...] = h3.astype(o_ref.dtype)


def nlinear_forward(x, params, *, block_b=1024, compute_dtype=jnp.bfloat16):
    """x: (B, C, H, W). params: dict of w1,b1,w2,b2,w3,b3 with weights as (in, out)."""
    B = x.shape[0]
    x_flat = x.reshape(B, -1)
    F = x_flat.shape[1]

    # Activations + first-layer weights in the (lower) compute dtype; everything
    # else stays f32. No unconditional upcast of the input.
    x_flat = x_flat.astype(compute_dtype)
    w1 = params["w1"].astype(compute_dtype)
    b1 = params["b1"].astype(jnp.float32)
    w2 = params["w2"].astype(jnp.float32)
    b2 = params["b2"].astype(jnp.float32)
    w3 = params["w3"].astype(jnp.float32)
    b3 = params["b3"].astype(jnp.float32)

    h1 = w1.shape[1]   # 64
    h2 = w2.shape[1]   # 16
    n_out = w3.shape[1]  # number_of_regressors (4)

    # Lane-align the layer-1 contraction dim (zero cols of x / zero rows of w1
    # contribute nothing).
    F_pad = _round_up(F, 128)
    if F_pad != F:
        x_flat = jnp.pad(x_flat, ((0, 0), (0, F_pad - F)))
        w1 = jnp.pad(w1, ((0, F_pad - F), (0, 0)))

    # Lane-dense output: pad the head to 128 columns (extra cols are ReLU(0)=0),
    # slice back after the call.
    n_pad = _round_up(max(n_out, 128), 128)
    if n_pad != n_out:
        w3 = jnp.pad(w3, ((0, 0), (0, n_pad - n_out)))
        b3 = jnp.pad(b3, ((0, 0), (0, n_pad - n_out)))

    # Batch tiling: TB <= 1024 keeps the double-buffered bf16 x tile tiny vs
    # v7x's 64 MiB VMEM while large enough to stream near the HBM roofline.
    tb = min(block_b, _round_up(B, 8))
    B_pad = _round_up(B, tb)
    if B_pad != B:
        x_flat = jnp.pad(x_flat, ((0, B_pad - B), (0, 0)))

    grid = (pl.cdiv(B_pad, tb),)

    x_bytes = B_pad * F_pad * x_flat.dtype.itemsize
    w_bytes = F_pad * h1 * w1.dtype.itemsize + h1 * h2 * 4 + h2 * n_pad * 4
    o_bytes = B_pad * n_pad * 4
    cost = pl.CostEstimate(
        flops=2 * B_pad * (F_pad * h1 + h1 * h2 + h2 * n_pad),
        transcendentals=0,
        bytes_accessed=x_bytes + w_bytes + o_bytes,
    )

    const = lambda shape: pl.BlockSpec(shape, lambda i: (0, 0))

    out = pl.pallas_call(
        _nlinear_kernel,
        out_shape=jax.ShapeDtypeStruct((B_pad, n_pad), jnp.float32),
        grid=grid,
        in_specs=[
            pl.BlockSpec((tb, F_pad), lambda i: (i, 0)),   # streamed x tile
            const((F_pad, h1)), const((1, h1)),            # VMEM-resident weights
            const((h1, h2)), const((1, h2)),
            const((h2, n_pad)), const((1, n_pad)),
        ],
        out_specs=pl.BlockSpec((tb, n_pad), lambda i: (i, 0)),
        compiler_params=pltpu.CompilerParams(
            dimension_semantics=("parallel",),
            vmem_limit_bytes=32 * 1024 * 1024,
        ),
        cost_estimate=cost,
    )(x_flat, w1, b1, w2, b2, w3, b3)

    return out[:B, :n_out]


def init_params(key, in_features, number_of_regressors=4):
    """Synthetic params matching nn.Linear init; stored as (in, out) for the kernel."""
    def linear_init(k, fan_in, fan_out):
        kw, kb = jax.random.split(k)
        bound = 1.0 / jnp.sqrt(fan_in)
        w = jax.random.uniform(kw, (fan_out, fan_in), jnp.float32, -bound, bound)
        b = jax.random.uniform(kb, (fan_out,), jnp.float32, -bound, bound)
        return w.T, b.reshape(1, fan_out)

    k1, k2, k3 = jax.random.split(key, 3)
    w1, b1 = linear_init(k1, in_features, 64)
    w2, b2 = linear_init(k2, 64, 16)
    w3, b3 = linear_init(k3, 16, number_of_regressors)
    return {"w1": w1, "b1": b1, "w2": w2, "b2": b2, "w3": w3, "b3": b3}


def reference_forward(x, params, *, compute_dtype=jnp.bfloat16):
    """Plain-JAX reference using the same mixed-precision recipe as the kernel."""
    B = x.shape[0]
    h = x.reshape(B, -1).astype(compute_dtype)
    w1 = params["w1"].astype(compute_dtype)
    h = jnp.maximum(
        jnp.dot(h, w1, preferred_element_type=jnp.float32) + params["b1"], 0.0)
    h = jnp.maximum(h @ params["w2"] + params["b2"], 0.0)
    h = jnp.maximum(h @ params["w3"] + params["b3"], 0.0)
    return h


if __name__ == "__main__":
    key = jax.random.PRNGKey(0)
    kx, kp = jax.random.split(key)

    # Small NCHW input: batch=2, channels=4, spatial=16x16 -> in_features=1024.
    B, C, H, W = 2, 4, 16, 16
    x = jax.random.normal(kx, (B, C, H, W), dtype=jnp.float32)

    params = init_params(kp, in_features=C * H * W, number_of_regressors=4)

    out = nlinear_forward(x, params)
    out = jax.block_until_ready(out)

    ref = reference_forward(x, params)
    assert out.shape == (B, 4), out.shape
    assert jnp.allclose(out, ref, atol=5e-3, rtol=5e-3), "mismatch vs reference"

    print("KERNEL_OK")
</pallas_src>

<mosaic_0001>
module attributes {stable_mosaic.version = 11 : i64} {
  func.func @_nlinear_kernel(%arg0: i32, %arg1: memref<8x1024xbf16, #tpu.memory_space<vmem>>, %arg2: memref<1024x64xbf16, #tpu.memory_space<vmem>>, %arg3: memref<1x64xf32, #tpu.memory_space<vmem>>, %arg4: memref<64x16xf32, #tpu.memory_space<vmem>>, %arg5: memref<1x16xf32, #tpu.memory_space<vmem>>, %arg6: memref<16x128xf32, #tpu.memory_space<vmem>>, %arg7: memref<1x128xf32, #tpu.memory_space<vmem>>, %arg8: memref<8x128xf32, #tpu.memory_space<vmem>>) attributes {dimension_semantics = [#tpu.dimension_semantics<parallel>], iteration_bounds = array<i64: 1>, scalar_prefetch = 0 : i64, scratch_operands = 0 : i64, tpu.core_type = #tpu.core_type<tc>, window_params = [{transform_indices = @transform_0, window_bounds = array<i64: 8, 1024>}, {pipeline_mode = #tpu.pipeline_mode<synchronous>, transform_indices = @transform_1, window_bounds = array<i64: 1024, 64>}, {pipeline_mode = #tpu.pipeline_mode<synchronous>, transform_indices = @transform_2, window_bounds = array<i64: 1, 64>}, {pipeline_mode = #tpu.pipeline_mode<synchronous>, transform_indices = @transform_3, window_bounds = array<i64: 64, 16>}, {pipeline_mode = #tpu.pipeline_mode<synchronous>, transform_indices = @transform_4, window_bounds = array<i64: 1, 16>}, {pipeline_mode = #tpu.pipeline_mode<synchronous>, transform_indices = @transform_5, window_bounds = array<i64: 16, 128>}, {pipeline_mode = #tpu.pipeline_mode<synchronous>, transform_indices = @transform_6, window_bounds = array<i64: 1, 128>}, {transform_indices = @transform_7, window_bounds = array<i64: 8, 128>}]} {
    %c0 = arith.constant 0 : index
    %c0_0 = arith.constant 0 : index
    %0 = vector.load %arg1[%c0, %c0_0] : memref<8x1024xbf16, #tpu.memory_space<vmem>>, vector<8x1024xbf16>
    %c0_1 = arith.constant 0 : index
    %c0_2 = arith.constant 0 : index
    %1 = vector.load %arg2[%c0_1, %c0_2] : memref<1024x64xbf16, #tpu.memory_space<vmem>>, vector<1024x64xbf16>
    %cst = arith.constant dense<0.000000e+00> : vector<8x64xf32>
    %2 = tpu.matmul %0, %1, %cst {dimension_numbers = #tpu.dot_dimension_numbers<[1], [0], [0], [1], [0, 0, 1, 1], [], []>} : vector<8x1024xbf16>, vector<1024x64xbf16>, vector<8x64xf32> -> vector<8x64xf32>
    %c0_3 = arith.constant 0 : index
    %c0_4 = arith.constant 0 : index
    %3 = vector.load %arg3[%c0_3, %c0_4] : memref<1x64xf32, #tpu.memory_space<vmem>>, vector<1x64xf32>
    %4 = vector.broadcast %3 : vector<1x64xf32> to vector<8x64xf32>
    %5 = arith.addf %2, %4 : vector<8x64xf32>
    %cst_5 = arith.constant 0.000000e+00 : f32
    %6 = vector.broadcast %cst_5 : f32 to vector<8x64xf32>
    %7 = arith.maximumf %5, %6 : vector<8x64xf32>
    %c0_6 = arith.constant 0 : index
    %c0_7 = arith.constant 0 : index
    %8 = vector.load %arg4[%c0_6, %c0_7] : memref<64x16xf32, #tpu.memory_space<vmem>>, vector<64x16xf32>
    %cst_8 = arith.constant dense<0.000000e+00> : vector<8x16xf32>
    %9 = tpu.matmul %7, %8, %cst_8 {dimension_numbers = #tpu.dot_dimension_numbers<[1], [0], [0], [1], [0, 0, 1, 1], [], []>} : vector<8x64xf32>, vector<64x16xf32>, vector<8x16xf32> -> vector<8x16xf32>
    %c0_9 = arith.constant 0 : index
    %c0_10 = arith.constant 0 : index
    %10 = vector.load %arg5[%c0_9, %c0_10] : memref<1x16xf32, #tpu.memory_space<vmem>>, vector<1x16xf32>
    %11 = vector.broadcast %10 : vector<1x16xf32> to vector<8x16xf32>
    %12 = arith.addf %9, %11 : vector<8x16xf32>
    %cst_11 = arith.constant 0.000000e+00 : f32
    %13 = vector.broadcast %cst_11 : f32 to vector<8x16xf32>
    %14 = arith.maximumf %12, %13 : vector<8x16xf32>
    %c0_12 = arith.constant 0 : index
    %c0_13 = arith.constant 0 : index
    %15 = vector.load %arg6[%c0_12, %c0_13] : memref<16x128xf32, #tpu.memory_space<vmem>>, vector<16x128xf32>
    %cst_14 = arith.constant dense<0.000000e+00> : vector<8x128xf32>
    %16 = tpu.matmul %14, %15, %cst_14 {dimension_numbers = #tpu.dot_dimension_numbers<[1], [0], [0], [1], [0, 0, 1, 1], [], []>} : vector<8x16xf32>, vector<16x128xf32>, vector<8x128xf32> -> vector<8x128xf32>
    %c0_15 = arith.constant 0 : index
    %c0_16 = arith.constant 0 : index
    %17 = vector.load %arg7[%c0_15, %c0_16] : memref<1x128xf32, #tpu.memory_space<vmem>>, vector<1x128xf32>
    %18 = vector.broadcast %17 : vector<1x128xf32> to vector<8x128xf32>
    %19 = arith.addf %16, %18 : vector<8x128xf32>
    %cst_17 = arith.constant 0.000000e+00 : f32
    %20 = vector.broadcast %cst_17 : f32 to vector<8x128xf32>
    %21 = arith.maximumf %19, %20 : vector<8x128xf32>
    %c0_18 = arith.constant 0 : index
    %c0_19 = arith.constant 0 : index
    %22 = vector.load %arg8[%c0_18, %c0_19] : memref<8x128xf32, #tpu.memory_space<vmem>>, vector<8x128xf32>
    tpu.vector_store %arg8[%c0_18, %c0_19], %21 {strides = array<i32>} : memref<8x128xf32, #tpu.memory_space<vmem>>, vector<8x128xf32>,
    return
  }
  func.func @transform_0(%arg0: i32) -> (i32, i32) {
    %c0_i32 = arith.constant 0 : i32
    %c0_i32_0 = arith.constant 0 : i32
    return %arg0, %c0_i32 : i32, i32
  }
  func.func @transform_1(%arg0: i32) -> (i32, i32) {
    %c0_i32 = arith.constant 0 : i32
    %c0_i32_0 = arith.constant 0 : i32
    %c0_i32_1 = arith.constant 0 : i32
    return %c0_i32, %c0_i32_0 : i32, i32
  }
  func.func @transform_2(%arg0: i32) -> (i32, i32) {
    %c0_i32 = arith.constant 0 : i32
    %c0_i32_0 = arith.constant 0 : i32
    %c0_i32_1 = arith.constant 0 : i32
    return %c0_i32, %c0_i32_0 : i32, i32
  }
  func.func @transform_3(%arg0: i32) -> (i32, i32) {
    %c0_i32 = arith.constant 0 : i32
    %c0_i32_0 = arith.constant 0 : i32
    %c0_i32_1 = arith.constant 0 : i32
    return %c0_i32, %c0_i32_0 : i32, i32
  }
  func.func @transform_4(%arg0: i32) -> (i32, i32) {
    %c0_i32 = arith.constant 0 : i32
    %c0_i32_0 = arith.constant 0 : i32
    %c0_i32_1 = arith.constant 0 : i32
    return %c0_i32, %c0_i32_0 : i32, i32
  }
  func.func @transform_5(%arg0: i32) -> (i32, i32) {
    %c0_i32 = arith.constant 0 : i32
    %c0_i32_0 = arith.constant 0 : i32
    %c0_i32_1 = arith.constant 0 : i32
    return %c0_i32, %c0_i32_0 : i32, i32
  }
  func.func @transform_6(%arg0: i32) -> (i32, i32) {
    %c0_i32 = arith.constant 0 : i32
    %c0_i32_0 = arith.constant 0 : i32
    %c0_i32_1 = arith.constant 0 : i32
    return %c0_i32, %c0_i32_0 : i32, i32
  }
  func.func @transform_7(%arg0: i32) -> (i32, i32) {
    %c0_i32 = arith.constant 0 : i32
    %c0_i32_0 = arith.constant 0 : i32
    return %arg0, %c0_i32 : i32, i32
  }
}

</mosaic_0001>

<bundles_post_ra>
// kernel: tpu_custom_call.1
= control target key start
LH: loop header
LB: loop body
LE: loop exit
PB: predicated region body
PF: predicated region fallthrough
CT: control target
= control target key end

     0   :  { %s1404_s0 = inlined_call_operand.vmem [shape: bf16[8,1024], index: 0, kind: input, shape index: {}]   ;;  %s1405_s1 = inlined_call_operand.vmem [shape: bf16[1024,64], index: 1, kind: input, shape index: {}]   ;;  %s1406_s2 = inlined_call_operand.vmem [shape: f32[1,64], index: 2, kind: input, shape index: {}]   ;;  %s1407_s3 = inlined_call_operand.vmem [shape: f32[64,16], index: 3, kind: input, shape index: {}]   ;;  %s1408_s4 = inlined_call_operand.vmem [shape: f32[1,16], index: 4, kind: input, shape index: {}]   ;;  %s1409_s5 = inlined_call_operand.vmem [shape: f32[16,128], index: 5, kind: input, shape index: {}]   ;;  %s1410_s6 = inlined_call_operand.vmem [shape: f32[1,128], index: 6, kind: input, shape index: {}]   ;;  %s1411_s7 = inlined_call_operand.hbm [shape: f32[8,128], index: 7, kind: output, shape index: {}]  }
   0x1   :  { %v1030_v0 = vld [vmem:[%s1405_s1 + $0x38] sm:$0xff]  ;;  %v1029_v4 = vld [vmem:[%s1405_s1 + $0x30] sm:$0xff]  ;;  %v1028_v8 = vld [vmem:[%s1405_s1 + $0x28] sm:$0xff] }
   0x2   :  { %v1038_v1 = vld [vmem:[%s1405_s1 + $0x78] sm:$0xff]  ;;  %575 = vmatpush.bf16.msra.mxu0 %v1030_v0  ;;  %v1037_v5 = vld [vmem:[%s1405_s1 + $0x70] sm:$0xff]  ;;  %v1036_v9 = vld [vmem:[%s1405_s1 + $0x68] sm:$0xff] }
   0x3   :  { %v1046_v2 = vld [vmem:[%s1405_s1 + $0xb8] sm:$0xff]  ;;  %588 = vmatpush.bf16.msra.mxu1 %v1038_v1  ;;  %v1045_v6 = vld [vmem:[%s1405_s1 + $0xb0] sm:$0xff]  ;;  %v1044_v10 = vld [vmem:[%s1405_s1 + $0xa8] sm:$0xff] }
   0x4   :  { %v1054_v3 = vld [vmem:[%s1405_s1 + $0xf8] sm:$0xff]  ;;  %601 = vmatpush.bf16.msra.mxu2 %v1046_v2  ;;  %v1053_v7 = vld [vmem:[%s1405_s1 + $0xf0] sm:$0xff]  ;;  %v1052_v11 = vld [vmem:[%s1405_s1 + $0xe8] sm:$0xff] }
   0x5   :  { %614 = vmatpush.bf16.msra.mxu3 %v1054_v3  ;;  %v1027_v12 = vld [vmem:[%s1405_s1 + $0x20] sm:$0xff]  ;;  %v1026_v16 = vld [vmem:[%s1405_s1 + $0x18] sm:$0xff]  ;;  %v1025_v20 = vld [vmem:[%s1405_s1 + $0x10] sm:$0xff] }
   0x6   :  { %576 = vmatpush.bf16.msra.mxu0 %v1029_v4  ;;  %v1035_v13 = vld [vmem:[%s1405_s1 + $0x60] sm:$0xff]  ;;  %v1034_v17 = vld [vmem:[%s1405_s1 + $0x58] sm:$0xff]  ;;  %v1033_v21 = vld [vmem:[%s1405_s1 + $0x50] sm:$0xff] }
   0x7   :  { %589 = vmatpush.bf16.msra.mxu1 %v1037_v5  ;;  %v1043_v14 = vld [vmem:[%s1405_s1 + $0xa0] sm:$0xff]  ;;  %v1042_v18 = vld [vmem:[%s1405_s1 + $0x98] sm:$0xff]  ;;  %v1041_v22 = vld [vmem:[%s1405_s1 + $0x90] sm:$0xff] }
   0x8   :  { %602 = vmatpush.bf16.msra.mxu2 %v1045_v6  ;;  %v1051_v15 = vld [vmem:[%s1405_s1 + $0xe0] sm:$0xff]  ;;  %v1050_v19 = vld [vmem:[%s1405_s1 + $0xd8] sm:$0xff]  ;;  %v1049_v23 = vld [vmem:[%s1405_s1 + $0xd0] sm:$0xff] }
   0x9   :  { %615 = vmatpush.bf16.msra.mxu3 %v1053_v7 }
   0xa   :  { %577 = vmatpush.bf16.msra.mxu0 %v1028_v8 }
   0xb   :  { %590 = vmatpush.bf16.msra.mxu1 %v1036_v9 }
   0xc   :  { %603 = vmatpush.bf16.msra.mxu2 %v1044_v10 }
   0xd   :  { %616 = vmatpush.bf16.msra.mxu3 %v1052_v11 }
   0xe   :  { %578 = vmatpush.bf16.msra.mxu0 %v1027_v12 }
   0xf   :  { %591 = vmatpush.bf16.msra.mxu1 %v1035_v13 }
  0x10   :  { %604 = vmatpush.bf16.msra.mxu2 %v1043_v14 }
  0x11   :  { %617 = vmatpush.bf16.msra.mxu3 %v1051_v15 }
  0x12   :  { %579 = vmatpush.bf16.msra.mxu0 %v1026_v16 }
  0x13   :  { %592 = vmatpush.bf16.msra.mxu1 %v1034_v17 }
  0x14   :  { %605 = vmatpush.bf16.msra.mxu2 %v1042_v18 }
  0x15   :  { %618 = vmatpush.bf16.msra.mxu3 %v1050_v19 }
  0x16   :  { %12 = vsyncpa [#allocation3], 0  ;;  %580 = vmatpush.bf16.msra.mxu0 %v1025_v20  ;;  %v1024_v24 = vld [vmem:[%s1405_s1 + $0x8] sm:$0xff]  ;;  %v27_v29 = vld [vmem:[%s1404_s0] sm:$0xff]  ;;  %vm692_vm0 = vcmask 523264   ;;  %vm723_vm1 = vcmask 130048  }
  0x17   :  { %593 = vmatpush.bf16.msra.mxu1 %v1033_v21  ;;  %v1032_v25 = vld [vmem:[%s1405_s1 + $0x48] sm:$0xff]  ;;  %v1023_v30 = vld [vmem:[%s1405_s1] sm:$0xff]  ;;  %v167_v33 = vunpack.c.l.b16 %v27_v29  ;;  %v168_v37 = vunpack.c.h.b16 %v27_v29  ;;  %v1062_v38 = vld [vmem:[%s1405_s1 + $0x138] sm:$0xff]  ;;  %s756_s23 = sshll.u32 %s1411_s7, 4  ;;  %s757_s23 = int_to_ptr.hbm [resolvable:$true] %s756_s23 }
  0x18   :  { %v1040_v26 = vld [vmem:[%s1405_s1 + $0x88] sm:$0xff]  ;;  %606 = vmatpush.bf16.msra.mxu2 %v1041_v22  ;;  %v1031_v31 = vld [vmem:[%s1405_s1 + $0x40] sm:$0xff]  ;;  %v1070_v39 = vld [vmem:[%s1405_s1 + $0x178] sm:$0xff] }
  0x19   :  { %619 = vmatpush.bf16.msra.mxu3 %v1049_v23  ;;  %v1048_v27 = vld [vmem:[%s1405_s1 + $0xc8] sm:$0xff]  ;;  %v1039_v34 = vld [vmem:[%s1405_s1 + $0x80] sm:$0xff]  ;;  %v1078_v40 = vld [vmem:[%s1405_s1 + $0x1b8] sm:$0xff]  ;;  %v175_v43 = vpack.c.b16 %v167_v33, %v167_v33  ;;  %v176_v45 = vpack.c.b16 %v168_v37, %v168_v37 }
  0x1a   :  { %v28_v28 = vld [vmem:[%s1404_s0 + $0x8] sm:$0xff]  ;;  %581 = vmatpush.bf16.msra.mxu0 %v1024_v24  ;;  %v1047_v35 = vld [vmem:[%s1405_s1 + $0xc0] sm:$0xff]  ;;  %v1086_v41 = vld [vmem:[%s1405_s1 + $0x1f8] sm:$0xff] }
  0x1b   :  { %594 = vmatpush.bf16.msra.mxu1 %v1032_v25  ;;  %v169_v32 = vunpack.c.l.b16 %v28_v28  ;;  %v170_v36 = vunpack.c.h.b16 %v28_v28  ;;  %v1061_v46 = vld [vmem:[%s1405_s1 + $0x130] sm:$0xff]  ;;  %v1060_v50 = vld [vmem:[%s1405_s1 + $0x128] sm:$0xff]  ;;  %v1059_v54 = vld [vmem:[%s1405_s1 + $0x120] sm:$0xff] }
  0x1c   :  { %607 = vmatpush.bf16.msra.mxu2 %v1040_v26  ;;  %v1069_v47 = vld [vmem:[%s1405_s1 + $0x170] sm:$0xff]  ;;  %v1068_v51 = vld [vmem:[%s1405_s1 + $0x168] sm:$0xff]  ;;  %v1067_v55 = vld [vmem:[%s1405_s1 + $0x160] sm:$0xff] }
  0x1d   :  { %620 = vmatpush.bf16.msra.mxu3 %v1048_v27  ;;  %v177_v42 = vpack.c.b16 %v169_v32, %v169_v32  ;;  %v178_v44 = vpack.c.b16 %v170_v36, %v170_v36  ;;  %v1077_v48 = vld [vmem:[%s1405_s1 + $0x1b0] sm:$0xff]  ;;  %v1076_v52 = vld [vmem:[%s1405_s1 + $0x1a8] sm:$0xff]  ;;  %v1075_v56 = vld [vmem:[%s1405_s1 + $0x1a0] sm:$0xff] }
  0x1e   :  { %582 = vmatpush.bf16.msra.mxu0 %v1023_v30  ;;  %v1085_v49 = vld [vmem:[%s1405_s1 + $0x1f0] sm:$0xff]  ;;  %v1084_v53 = vld [vmem:[%s1405_s1 + $0x1e8] sm:$0xff]  ;;  %v1083_v57 = vld [vmem:[%s1405_s1 + $0x1e0] sm:$0xff] }
  0x1f   :  { %595 = vmatpush.bf16.msra.mxu1 %v1031_v31  ;;  %v1058_v58 = vld [vmem:[%s1405_s1 + $0x118] sm:$0xff]  ;;  %v1057_v62 = vld [vmem:[%s1405_s1 + $0x110] sm:$0xff]  ;;  %v1056_v2 = vld [vmem:[%s1405_s1 + $0x108] sm:$0xff] }
  0x20   :  { %608 = vmatpush.bf16.msra.mxu2 %v1039_v34  ;;  %v1066_v59 = vld [vmem:[%s1405_s1 + $0x158] sm:$0xff]  ;;  %v1065_v63 = vld [vmem:[%s1405_s1 + $0x150] sm:$0xff]  ;;  %v1064_v3 = vld [vmem:[%s1405_s1 + $0x148] sm:$0xff] }
  0x21   :  { %621 = vmatpush.bf16.msra.mxu3 %v1047_v35  ;;  %583 = vmatmul.bf16.vlgmr.msra.gmra.mxu0 %v175_v43  ;;  %v1074_v60 = vld [vmem:[%s1405_s1 + $0x198] sm:$0xff]  ;;  %v1073_v0 = vld [vmem:[%s1405_s1 + $0x190] sm:$0xff]  ;;  %v1072_v5 = vld [vmem:[%s1405_s1 + $0x188] sm:$0xff] }
  0x22   :  { %627 = vmatpush.bf16.msrb.mxu0 %v1062_v38  ;;  %596 = vmatmul.bf16.vlgmr.msra.gmra.mxu1 %v176_v45  ;;  %v1082_v61 = vld [vmem:[%s1405_s1 + $0x1d8] sm:$0xff]  ;;  %v1081_v1 = vld [vmem:[%s1405_s1 + $0x1d0] sm:$0xff]  ;;  %v1080_v6 = vld [vmem:[%s1405_s1 + $0x1c8] sm:$0xff] }
  0x23   :  { %640 = vmatpush.bf16.msrb.mxu1 %v1070_v39  ;;  %609 = vmatmul.bf16.vlgmr.msra.gmra.mxu2 %v177_v42  ;;  %v29_v4 = vld [vmem:[%s1404_s0 + $0x10] sm:$0xff]  ;;  %v30_v7 = vld [vmem:[%s1404_s0 + $0x18] sm:$0xff]  ;;  %v1055_v10 = vld [vmem:[%s1405_s1 + $0x100] sm:$0xff]  ;;  %s1117_s0 = smov [#allocation2]  }
  0x24   :  { %653 = vmatpush.bf16.msrb.mxu2 %v1078_v40  ;;  %622 = vmatmul.bf16.vlgmr.msra.gmra.mxu3 %v178_v44  ;;  %v171_v8 = vunpack.c.l.b16 %v29_v4  ;;  %v172_v9 = vunpack.c.h.b16 %v29_v4  ;;  %v1063_v11 = vld [vmem:[%s1405_s1 + $0x140] sm:$0xff]  ;;  %v173_v12 = vunpack.c.l.b16 %v30_v7  ;;  %v174_v13 = vunpack.c.h.b16 %v30_v7  ;;  %v687_v20 = vld [vmem:[%s1407_s3 + $0x38] sm:$0xff]  ;;  %v686_v21 = vld [vmem:[%s1407_s3 + $0x30] sm:$0xff]  ;;  %s754_s20 = sshll.u32 %s1117_s0, 4  ;;  %s755_s20 = int_to_ptr.vmem [resolvable:$true] %s754_s20 }
  0x25   :  { %666 = vmatpush.bf16.msrb.mxu3 %v1086_v41  ;;  %v1071_v14 = vld [vmem:[%s1405_s1 + $0x180] sm:$0xff]  ;;  %v685_v22 = vld [vmem:[%s1407_s3 + $0x28] sm:$0xff]  ;;  %v683_v26 = vld [vmem:[%s1407_s3 + $0x18] sm:$0xff] }
  0x26   :  { %628 = vmatpush.bf16.msrb.mxu0 %v1061_v46  ;;  %v1079_v15 = vld [vmem:[%s1405_s1 + $0x1c0] sm:$0xff]  ;;  %v179_v16 = vpack.c.b16 %v171_v8, %v171_v8  ;;  %v180_v17 = vpack.c.b16 %v172_v9, %v172_v9  ;;  %v181_v18 = vpack.c.b16 %v173_v12, %v173_v12  ;;  %v182_v19 = vpack.c.b16 %v174_v13, %v174_v13  ;;  %v682_v27 = vld [vmem:[%s1407_s3 + $0x10] sm:$0xff]  ;;  %v681_v30 = vld [vmem:[%s1407_s3 + $0x8] sm:$0xff] }
  0x27   :  { %641 = vmatpush.bf16.msrb.mxu1 %v1069_v47  ;;  %v684_v24 = vld [vmem:[%s1407_s3 + $0x20] sm:$0xff]  ;;  %v718_v34 = vld [vmem:[%s1409_s5 + $0x8] sm:$0xff] }
  0x28   :  { %654 = vmatpush.bf16.msrb.mxu2 %v1077_v48  ;;  %v680_v33 = vld [vmem:[%s1407_s3] sm:$0xff] }
  0x29   :  { %667 = vmatpush.bf16.msrb.mxu3 %v1085_v49  ;;  %v717_v35 = vld [vmem:[%s1409_s5] sm:$0xff] }
  0x2a   :  { %629 = vmatpush.bf16.msrb.mxu0 %v1060_v50  ;;  %v1088_v36 = vld [vmem:[%s1406_s2] ss:$0 sm:$0xff] }
  0x2b   :  { %642 = vmatpush.bf16.msrb.mxu1 %v1068_v51 }
  0x2c   :  { %655 = vmatpush.bf16.msrb.mxu2 %v1076_v52 }
  0x2d   :  { %668 = vmatpush.bf16.msrb.mxu3 %v1084_v53 }
  0x2e   :  { %630 = vmatpush.bf16.msrb.mxu0 %v1059_v54 }
  0x2f   :  { %643 = vmatpush.bf16.msrb.mxu1 %v1067_v55 }
  0x30   :  { %656 = vmatpush.bf16.msrb.mxu2 %v1075_v56  ;;  %v1089_v56 = vld [vmem:[%s1408_s4] ss:$0 sm:$0xff] }
  0x31   :  { %669 = vmatpush.bf16.msrb.mxu3 %v1083_v57 }
  0x32   :  { %631 = vmatpush.bf16.msrb.mxu0 %v1058_v58 }
  0x33   :  { %644 = vmatpush.bf16.msrb.mxu1 %v1066_v59 }
  0x34   :  { %657 = vmatpush.bf16.msrb.mxu2 %v1074_v60  ;;  %v1090_v60 = vld [vmem:[%s1410_s6] ss:$0 sm:$0xff] }
  0x35   :  { %670 = vmatpush.bf16.msrb.mxu3 %v1082_v61 }
  0x36   :  { %632 = vmatpush.bf16.msrb.mxu0 %v1057_v62 }
  0x37   :  { %645 = vmatpush.bf16.msrb.mxu1 %v1065_v63 }
  0x38   :  { %658 = vmatpush.bf16.msrb.mxu2 %v1073_v0 }
  0x39   :  { %671 = vmatpush.bf16.msrb.mxu3 %v1081_v1 }
  0x3a   :  { %633 = vmatpush.bf16.msrb.mxu0 %v1056_v2 }
  0x3b   :  { %646 = vmatpush.bf16.msrb.mxu1 %v1064_v3 }
  0x3c   :  { %659 = vmatpush.bf16.msrb.mxu2 %v1072_v5 }
  0x3d   :  { %672 = vmatpush.bf16.msrb.mxu3 %v1080_v6 }
  0x3e   :  { %634 = vmatpush.bf16.msrb.mxu0 %v1055_v10 }
  0x3f   :  { %647 = vmatpush.bf16.msrb.mxu1 %v1063_v11 }
  0x40   :  { %660 = vmatpush.bf16.msrb.mxu2 %v1071_v14 }
  0x41   :  { %673 = vmatpush.bf16.msrb.mxu3 %v1079_v15  ;;  %635 = vmatmul.bf16.vlgmr.msrb.gmra.mxu0 %v179_v16 }
  0x42   :  { %648 = vmatmul.bf16.vlgmr.msrb.gmra.mxu1 %v180_v17  ;;  %704 = vmatpush.msra.mxu0 %v687_v20 }
  0x43   :  { %661 = vmatmul.bf16.vlgmr.msrb.gmra.mxu2 %v181_v18  ;;  %741 = vmatpush.msra.mxu1 %v718_v34 }
  0x44   :  { %674 = vmatmul.bf16.vlgmr.msrb.gmra.mxu3 %v182_v19  ;;  %705 = vmatpush.msra.mxu0 %v686_v21 }
  0x45   :  { %742 = vmatpush.msra.mxu1 %v717_v35 }
  0x46   :  { %706 = vmatpush.msra.mxu0 %v685_v22 }
  0x48   :  { %707 = vmatpush.msra.mxu0 %v684_v24 }
  0x4a   :  { %708 = vmatpush.msra.mxu0 %v683_v26 }
  0x4c   :  { %709 = vmatpush.msra.mxu0 %v682_v27 }
  0x4e   :  { %710 = vmatpush.msra.mxu0 %v681_v30 }
  0x50   :  { %711 = vmatpush.msra.mxu0 %v680_v33 }
  0x9e   :  { %v584_v23 = vpop.f32.mrf.mxu0 }
  0x9f   :  { %v597_v25 = vpop.f32.mrf.mxu1  ;;  %v585_v39 = vadd.f32 %v1088_v36, %v584_v23 }
  0xa1   :  { %v598_v40 = vadd.f32 %v597_v25, %v585_v39 }
  0xa6   :  { %v610_v28 = vpop.f32.mrf.mxu2  ;;  %v586_v31 = vpop.f32.mrf.mxu0 }
  0xa7   :  { %v623_v29 = vpop.f32.mrf.mxu3  ;;  %v599_v32 = vpop.f32.mrf.mxu1  ;;  %v611_v41 = vadd.f32 %v610_v28, %v598_v40 }
  0xa9   :  { %v624_v42 = vadd.f32 %v623_v29, %v611_v41 }
  0xae   :  { %v612_v37 = vpop.f32.mrf.mxu2 }
  0xaf   :  { %v625_v38 = vpop.f32.mrf.mxu3 }
  0xbe   :  { %v636_v43 = vpop.f32.mrf.mxu0 }
  0xbf   :  { %v649_v44 = vpop.f32.mrf.mxu1  ;;  %v637_v45 = vadd.f32 %v636_v43, %v624_v42 }
  0xc1   :  { %v650_v46 = vadd.f32 %v649_v44, %v637_v45 }
  0xc6   :  { %v662_v47 = vpop.f32.mrf.mxu2  ;;  %v638_v50 = vpop.f32.mrf.mxu0 }
  0xc7   :  { %v675_v48 = vpop.f32.mrf.mxu3  ;;  %v663_v49 = vadd.f32 %v662_v47, %v650_v46  ;;  %v651_v51 = vpop.f32.mrf.mxu1 }
  0xc9   :  { %v676_v52 = vadd.f32 %v675_v48, %v663_v49 }
  0xcb   :  { %v679_v53 = vmax.f32 %v676_v52, 0.0 }
  0xcd   :  { %1021 = vmatmul.msk.f32.vlgmr.msra.gmra.mxu0 %vm692_vm0, %v679_v53 }
  0xce   :  { %v664_v54 = vpop.f32.mrf.mxu2 }
  0xcf   :  { %v677_v55 = vpop.f32.mrf.mxu3 }
 0x14a   :  { %v713_v57 = vpop.f32.mrf.mxu0 }
 0x14b   :  { %v714_v58 = vadd.f32 %v1089_v56, %v713_v57 }
 0x14d   :  { %v716_v59 = vmax.f32 %v714_v58, 0.0 }
 0x14f   :  { %1022 = vmatmul.msk.f32.vlgmr.msra.gmra.mxu1 %vm723_vm1, %v716_v59 }
 0x1cc   :  { %v744_v61 = vpop.f32.mrf.mxu1 }
 0x1cd   :  { %v745_v62 = vadd.f32 %v1090_v60, %v744_v61 }
 0x1cf   :  { %v747_v63 = vmax.f32 %v745_v62, 0.0 }
 0x1d1   :  { %748 = vst [vmem:[#allocation2] sm:$0xff] %v747_v63 }
 0x1d2   :  { %759 = dma.vmem_to_hbm [thread:$0]  %s755_s20, 128, %s757_s23, [#allocation3]  }
 0x1d3   :  { %1115 = dma.done.wait [#allocation3], 128  }
 0x1d4   :  { %1116 = vsyncadd [#allocation3], 4294967168 }
 0x1d5   :  { %764 = vsyncpa [#allocation3], 1 }

</bundles_post_ra>
